<compile_context>
chip_gen: v7x
topology: tpu7x:2x2x1
jax: 0.10.0
libtpu: 0.0.40
codegen_flags: <defaults>
</compile_context>

<pallas_src>
import jax
import jax.numpy as jnp
from jax import lax
from jax.experimental import pallas as pl
from jax.experimental.pallas import tpu as pltpu


def _round_up(x, m):
    return ((x + m - 1) // m) * m


def _cdiv(a, b):
    return (a + b - 1) // b


def _gather_rows_kernel(labels_smem, table_ref, out_ref):
    """out[r, :] = table[labels[base + r], :] for the current N-tile.

    labels_smem: (N_pad,) int32 effective class ids (scalar-prefetched, SMEM)
    table_ref:   (V, H_pad) embedding table, fully resident in VMEM
    out_ref:     (TILE_N, H_pad) output block (lane-dense: H_pad % 128 == 0)

    Pure vector load/store row copies: bit-exact embedding lookup, no MXU.
    """
    tile_n = out_ref.shape[0]
    base = pl.program_id(0) * tile_n

    def body(r, carry):
        lbl = labels_smem[base + r]
        out_ref[pl.ds(r, 1), :] = table_ref[pl.ds(lbl, 1), :]
        return carry

    lax.fori_loop(0, tile_n, body, 0, unroll=False)


def label_embedder_forward(
    labels,
    embedding_table,
    *,
    num_classes,
    dropout_prob,
    train,
    rng_key=None,
    force_drop_ids=None,
    tile_n=256,
):
    """Pallas implementation of LabelEmbedder.forward.

    labels:            (N,) int class ids
    embedding_table:   (num_classes + use_cfg, hidden_size) float
    returns:           (N, hidden_size), same dtype as the table (bit-exact gather)
    """
    N = labels.shape[0]
    V, H = embedding_table.shape
    dtype = embedding_table.dtype
    itemsize = jnp.dtype(dtype).itemsize

    # ---- token_drop (plain-JAX glue; RNG not bit-matched to torch.rand) ----
    use_dropout = dropout_prob > 0
    if (train and use_dropout) or (force_drop_ids is not None):
        if force_drop_ids is not None:
            drop_ids = force_drop_ids == 1
        else:
            if rng_key is None:
                raise ValueError("rng_key is required for label dropout in train mode")
            drop_ids = jax.random.uniform(rng_key, (N,), dtype=jnp.float32) < dropout_prob
        eff = jnp.where(drop_ids, num_classes, labels.astype(jnp.int32))
    else:
        eff = labels.astype(jnp.int32)

    # Bounds safety: clamp instead of OOB VMEM access. Note: PyTorch's
    # nn.Embedding would raise on an out-of-range index; here it is silently
    # mapped to the last row.  TODO(synk): optionally add a debug_check.
    eff = jnp.clip(eff, 0, V - 1).astype(jnp.int32)

    # ---- dtype-aware tiling ----
    sub = max(8, 32 // itemsize)            # f32 -> 8, bf16 -> 16, int8/fp8 -> 32
    target_steps = 4                        # >= 2 steps so both v7x TCs get work
    TILE_N = max(sub, _round_up(_cdiv(N, target_steps), sub))
    TILE_N = min(TILE_N, _round_up(tile_n, sub))
    N_pad = _round_up(N, TILE_N)
    H_pad = _round_up(H, 128)               # lane-dense output blocks

    eff_p = eff if N_pad == N else jnp.pad(eff, (0, N_pad - N))
    # TODO(synk): pad the table once at parameter-creation time; padding here
    # costs an extra HBM read+write of the table whenever H % 128 != 0.
    if H_pad == H:
        table_p = embedding_table
    else:
        table_p = jnp.pad(embedding_table, ((0, 0), (0, H_pad - H)))

    grid = (N_pad // TILE_N,)

    # Generation-aware VMEM ceiling (leave 1/8 headroom for compiler scratch).
    try:
        vmem_cap = int(pltpu.get_tpu_info().vmem_capacity_bytes)
    except Exception:  # info unavailable -> conservative (valid on every gen)
        vmem_cap = 64 * 1024 * 1024
    vmem_cap = (vmem_cap * 7) // 8

    # TODO(synk): if V*H_pad ever exceeds VMEM (huge conditioning vocab), tile
    # the table over V and gather from the matching V-tile instead of residency.

    def build(single_buffer_table):
        table_bufs = 1 if single_buffer_table else 2
        table_kwargs = {"pipeline_mode": pl.Buffered(1)} if single_buffer_table else {}
        # VMEM budget: resident table + double-buffered output tiles + slack.
        # Labels live in SMEM, and the gather has no one-hot intermediate.
        needed = (table_bufs * V * H_pad * itemsize
                  + 2 * TILE_N * H_pad * itemsize
                  + (1 << 20))
        vmem_limit = int(min(max(needed, 16 * 1024 * 1024), vmem_cap))
        return pl.pallas_call(
            _gather_rows_kernel,
            out_shape=jax.ShapeDtypeStruct((N_pad, H_pad), dtype),
            grid_spec=pltpu.PrefetchScalarGridSpec(
                num_scalar_prefetch=1,          # labels -> SMEM
                grid=grid,
                in_specs=[
                    # Resident table: constant index_map -> DMA'd once.
                    pl.BlockSpec((V, H_pad), lambda i, lbl: (0, 0), **table_kwargs),
                ],
                out_specs=pl.BlockSpec((TILE_N, H_pad), lambda i, lbl: (i, 0)),
            ),
            compiler_params=pltpu.CompilerParams(
                dimension_semantics=("parallel",),
                vmem_limit_bytes=vmem_limit,
            ),
        )

    try:
        out = build(True)(eff_p, table_p)
    except Exception:
        # Fallback if pl.Buffered(1) is rejected by this jax/Mosaic version.
        out = build(False)(eff_p, table_p)

    if N_pad == N and H_pad == H:
        return out
    return out[:N, :H]


if __name__ == "__main__":
    num_classes = 16
    hidden_size = 128
    dropout_prob = 0.1
    N = 8

    key = jax.random.PRNGKey(0)
    k_table, k_labels, k_drop = jax.random.split(key, 3)

    use_cfg_embedding = int(dropout_prob > 0)
    embedding_table = jax.random.normal(
        k_table, (num_classes + use_cfg_embedding, hidden_size), dtype=jnp.float32
    )
    labels = jax.random.randint(k_labels, (N,), 0, num_classes, dtype=jnp.int32)

    # Training mode (stochastic CFG label dropout): run + shape check.
    out_train = jax.block_until_ready(label_embedder_forward(
        labels, embedding_table,
        num_classes=num_classes, dropout_prob=dropout_prob,
        train=True, rng_key=k_drop,
    ))
    assert out_train.shape == (N, hidden_size)

    # Eval mode (deterministic): bit-exact parity with a plain gather.
    out_eval = jax.block_until_ready(label_embedder_forward(
        labels, embedding_table,
        num_classes=num_classes, dropout_prob=dropout_prob, train=False,
    ))
    assert jnp.array_equal(out_eval, embedding_table[labels]), "eval-mode mismatch"

    # Forced-drop path (deterministic parity with torch.where semantics).
    force = jnp.array([1, 0, 1, 0, 0, 1, 0, 1], dtype=jnp.int32)
    out_force = jax.block_until_ready(label_embedder_forward(
        labels, embedding_table,
        num_classes=num_classes, dropout_prob=dropout_prob,
        train=False, force_drop_ids=force,
    ))
    ref_force = embedding_table[jnp.where(force == 1, num_classes, labels)]
    assert jnp.array_equal(out_force, ref_force), "force-drop mismatch"

    # Odd shapes (H % 128 != 0, N % TILE_N != 0, multi-step grid) + bf16 table.
    N2 = 40
    table_bf16 = jax.random.normal(
        k_table, (num_classes + 1, 96), dtype=jnp.float32).astype(jnp.bfloat16)
    labels2 = jax.random.randint(k_drop, (N2,), 0, num_classes, dtype=jnp.int32)
    out2 = jax.block_until_ready(label_embedder_forward(
        labels2, table_bf16,
        num_classes=num_classes, dropout_prob=dropout_prob, train=False,
    ))
    assert out2.shape == (N2, 96) and out2.dtype == jnp.bfloat16
    assert jnp.array_equal(out2, table_bf16[labels2]), "bf16/padded-shape mismatch"

    print("KERNEL_OK")
</pallas_src>

<mosaic_0001>
module attributes {stable_mosaic.version = 11 : i64} {
  func.func @_gather_rows_kernel(%arg0: i32, %arg1: memref<8xi32, #tpu.memory_space<smem>>, %arg2: memref<17x128xf32, #tpu.memory_space<vmem>>, %arg3: memref<8x128xf32, #tpu.memory_space<vmem>>) attributes {dimension_semantics = [#tpu.dimension_semantics<parallel>], iteration_bounds = array<i64: 1>, scalar_prefetch = 1 : i64, scratch_operands = 0 : i64, tpu.core_type = #tpu.core_type<tc>, window_params = [{pipeline_mode = #tpu.pipeline_mode<synchronous>, transform_indices = @transform_0, window_bounds = array<i64: 17, 128>}, {transform_indices = @transform_1, window_bounds = array<i64: 8, 128>}]} {
    %c8_i32 = arith.constant 8 : i32
    %0 = arith.muli %arg0, %c8_i32 : i32
    %c0_i32 = arith.constant 0 : i32
    %c8_i32_0 = arith.constant 8 : i32
    %1 = arith.addi %c0_i32, %c8_i32_0 : i32
    %c1_i32 = arith.constant 1 : i32
    scf.for %arg4 = %c0_i32 to %1 step %c1_i32  : i32 {
      %2 = arith.addi %0, %arg4 : i32
      %3 = arith.index_cast %2 : i32 to index
      %4 = memref.load %arg1[%3] : memref<8xi32, #tpu.memory_space<smem>>
      %5 = arith.index_cast %4 : i32 to index
      %c0 = arith.constant 0 : index
      %6 = vector.load %arg2[%5, %c0] : memref<17x128xf32, #tpu.memory_space<vmem>>, vector<1x128xf32>
      %7 = arith.index_cast %arg4 : i32 to index
      %c0_2 = arith.constant 0 : index
      %8 = vector.load %arg3[%7, %c0_2] : memref<8x128xf32, #tpu.memory_space<vmem>>, vector<1x128xf32>
      tpu.vector_store %arg3[%7, %c0_2], %6 {strides = array<i32>} : memref<8x128xf32, #tpu.memory_space<vmem>>, vector<1x128xf32>,
    }
    %c8_i32_1 = arith.constant 8 : i32
    return
  }
  func.func @transform_0(%arg0: i32, %arg1: memref<8xi32, #tpu.memory_space<smem>>) -> (i32, i32) {
    %c0_i32 = arith.constant 0 : i32
    %c0_i32_0 = arith.constant 0 : i32
    %c0_i32_1 = arith.constant 0 : i32
    return %c0_i32, %c0_i32_0 : i32, i32
  }
  func.func @transform_1(%arg0: i32, %arg1: memref<8xi32, #tpu.memory_space<smem>>) -> (i32, i32) {
    %c0_i32 = arith.constant 0 : i32
    %c0_i32_0 = arith.constant 0 : i32
    return %arg0, %c0_i32 : i32, i32
  }
}

module attributes {stable_mosaic.version = 11 : i64} {
  func.func @_gather_rows_kernel(%arg0: i32, %arg1: memref<8xi32, #tpu.memory_space<smem>>, %arg2: memref<17x128xf32, #tpu.memory_space<vmem>>, %arg3: memref<8x128xf32, #tpu.memory_space<vmem>>) attributes {dimension_semantics = [#tpu.dimension_semantics<parallel>], iteration_bounds = array<i64: 1>, scalar_prefetch = 1 : i64, scratch_operands = 0 : i64, tpu.core_type = #tpu.core_type<tc>, window_params = [{pipeline_mode = #tpu.pipeline_mode<synchronous>, transform_indices = @transform_0, window_bounds = array<i64: 17, 128>}, {transform_indices = @transform_1, window_bounds = array<i64: 8, 128>}]} {
    %c8_i32 = arith.constant 8 : i32
    %0 = arith.muli %arg0, %c8_i32 : i32
    %c0_i32 = arith.constant 0 : i32
    %c8_i32_0 = arith.constant 8 : i32
    %1 = arith.addi %c0_i32, %c8_i32_0 : i32
    %c1_i32 = arith.constant 1 : i32
    scf.for %arg4 = %c0_i32 to %1 step %c1_i32  : i32 {
      %2 = arith.addi %0, %arg4 : i32
      %3 = arith.index_cast %2 : i32 to index
      %4 = memref.load %arg1[%3] : memref<8xi32, #tpu.memory_space<smem>>
      %5 = arith.index_cast %4 : i32 to index
      %c0 = arith.constant 0 : index
      %6 = vector.load %arg2[%5, %c0] : memref<17x128xf32, #tpu.memory_space<vmem>>, vector<1x128xf32>
      %7 = arith.index_cast %arg4 : i32 to index
      %c0_2 = arith.constant 0 : index
      %8 = vector.load %arg3[%7, %c0_2] : memref<8x128xf32, #tpu.memory_space<vmem>>, vector<1x128xf32>
      tpu.vector_store %arg3[%7, %c0_2], %6 {strides = array<i32>} : memref<8x128xf32, #tpu.memory_space<vmem>>, vector<1x128xf32>,
    }
    %c8_i32_1 = arith.constant 8 : i32
    return
  }
  func.func @transform_0(%arg0: i32, %arg1: memref<8xi32, #tpu.memory_space<smem>>) -> (i32, i32) {
    %c0_i32 = arith.constant 0 : i32
    %c0_i32_0 = arith.constant 0 : i32
    %c0_i32_1 = arith.constant 0 : i32
    return %c0_i32, %c0_i32_0 : i32, i32
  }
  func.func @transform_1(%arg0: i32, %arg1: memref<8xi32, #tpu.memory_space<smem>>) -> (i32, i32) {
    %c0_i32 = arith.constant 0 : i32
    %c0_i32_0 = arith.constant 0 : i32
    return %arg0, %c0_i32 : i32, i32
  }
}

</mosaic_0001>

<bundles_post_ra>
// kernel: tpu_custom_call.1
= control target key start
LH: loop header
LB: loop body
LE: loop exit
PB: predicated region body
PF: predicated region fallthrough
CT: control target
= control target key end

     0   :  { %s200_s0 = inlined_call_operand.hbm [shape: s32[8], index: 0, kind: input, shape index: {}]   ;;  %s201_s1 = inlined_call_operand.hbm [shape: f32[17,128], index: 1, kind: input, shape index: {}]   ;;  %s202_s2 = inlined_call_operand.hbm [shape: f32[8,128], index: 2, kind: output, shape index: {}]  }
   0x1   :  { %s76_s11 = scalar_lea.hbm %s200_s0, 16 }
   0x2   :  { %p77_p0 = scmp.ne.s32.totalorder %s200_s0, %s76_s11  ;;  %p80_p1 = scmp.lt.u32.totalorder %s76_s11, %s200_s0 }
   0x4   :  { %p82_p2 = pnand %p80_p1, %p77_p0 }
   0x6   :  { %85 = shalt.err (!%p82_p2)  }
   0x7   :  { %s144_s16 = smov [#allocation3]  }
   0x8   :  { %8 = dma.hbm_to_smem %s200_s0, 16, %s144_s16, [#allocation2] }
   0x9   :  { %134 = dma.done.wait [#allocation2], 16 }
   0xa   :  { %135 = vsyncadd [#allocation2], 4294967280 }
   0xb   :  { %10 = sfence }
   0xc   :  { %11 = vsyncpa [#allocation5], 0 }
   0xd   :  { %12 = vsyncpa [#allocation6], 0  ;;  %s145_s19 = smov [#allocation4]   ;;  %s86_s23 = scalar_lea.hbm %s201_s1, 384 }
   0xe   :  { %s18_s20 = sshll.u32 %s145_s19, 4  ;;  %p87_p3 = scmp.ne.s32.totalorder %s201_s1, %s86_s23  ;;  %s19_s20 = int_to_ptr.vmem [resolvable:$true] %s18_s20 }
   0xf   :  { %p90_p4 = scmp.lt.u32.totalorder %s86_s23, %s201_s1 }
  0x11   :  { %p92_p5 = pnand %p90_p4, %p87_p3 }
  0x13   :  { %95 = shalt.err (!%p92_p5)
}
  0x14   :  { %s96_s0 = scalar_lea.vmem %s19_s20, 384  ;;  %p101_p7 = scmp.lt.s32.totalorder %s19_s20, %s19_s20 }
  0x15   :  { %p97_p6 = scmp.ne.s32.totalorder %s19_s20, %s96_s0  ;;  %p102_p8 = scmp.lt.s32.totalorder %s96_s0, %s96_s0 }
  0x17   :  { %p103_p9 = por %p102_p8, %p101_p7 }
  0x19   :  { %p104_p10 = pnand %p103_p9, %p97_p6 }
  0x1b   :  { %107 = shalt.err (!%p104_p10)
}
  0x1c   :  { %s146_s28 = smov 128   ;;  %s147_s29 = smov 8  }
  0x1d   :  { %24 = dma.hbm_to_vmem [thread:$0]  %s201_s1, 384, %s19_s20, [#allocation5], %s146_s28, %s146_s28, %s147_s29  }
  0x1e   :  { %136 = dma.done.wait [#allocation5], 384  }
  0x1f   :  { %137 = vsyncadd [#allocation5], 4294966912  ;;  %s140_s4 = smov 0  }
  0x20 LB: > { %s36_s5 = sld [smem:[#allocation3 + %s142_s4]]  ;;  %s39_s7 = scalar_lea.vmem [#allocation7], %s142_s4  ;;  %s142_s4 = sphi %s140_s4, %s34_s4  }
  0x21   : > { %s34_s4 = sadd.s32 1, %s142_s4  }
  0x22   : > { %p31_p11 = scmp.ge.s32.totalorder %s34_s4, 8  }
  0x23   :  { %s148_s8 = smov (%p31_p11), [#allocation7]  }
  0x24   :  { %33 = sbr.rel (!%p31_p11) target bundleno = 32 (0x20), region = 37  ;;  %s47_s9 = sshll.u32 (%p31_p11), %s148_s8, 4  ;;  %s48_s9 = int_to_ptr.vmem [resolvable:$true] %s47_s9 }
  0x25   :  { %s108_s10 = scalar_lea.vmem (%p31_p11), %s48_s9, 128  ;;  %p113_p13 = scmp.lt.s32.totalorder (%p31_p11), %s48_s9, %s48_s9 }
  0x26   : > { %s37_s6 = scalar_lea.vmem [#allocation4], %s36_s5  ;;  %p109_p12 = scmp.ne.s32.totalorder (%p31_p11), %s48_s9, %s108_s10 }
  0x27   : > { %v38_v0 = vld [vmem:[%s37_s6] sm:$0x1]  ;;  %p114_p0 = scmp.lt.s32.totalorder (%p31_p11), %s108_s10, %s108_s10 }
  0x28   : > { %40 = vst [vmem:[%s39_s7] sm:$0x1] %v38_v0 }
  0x29   :  { %p115_p1 = por (%p31_p11), %p114_p0, %p113_p13 }
  0x2b   :  { %p116_p2 = pnand %p115_p1, %p109_p12 }
  0x2d   :  { %119 = shalt.err (!%p116_p2)
}
  0x2e   :  { %s120_s12 = scalar_lea.hbm %s202_s2, 128 }
  0x2f   :  { %p121_p3 = scmp.ne.s32.totalorder %s202_s2, %s120_s12  ;;  %p124_p4 = scmp.lt.u32.totalorder %s120_s12, %s202_s2 }
  0x31   :  { %p126_p5 = pnand %p124_p4, %p121_p3 }
  0x33   :  { %129 = shalt.err (!%p126_p5)
}
  0x34   :  { %50 = dma.vmem_to_hbm [thread:$0]  %s48_s9, 128, %s202_s2, [#allocation6]  }
  0x35   :  { %138 = dma.done.wait [#allocation6], 128  }
  0x36   :  { %139 = vsyncadd [#allocation6], 4294967168 }
  0x37   :  { %54 = vsyncpa [#allocation5], 1 }
  0x38   :  { %55 = vsyncpa [#allocation6], 1 }

// kernel: tpu_custom_call.1
= control target key start
LH: loop header
LB: loop body
LE: loop exit
PB: predicated region body
PF: predicated region fallthrough
CT: control target
= control target key end

     0   :  { %s200_s0 = inlined_call_operand.hbm [shape: s32[8], index: 0, kind: input, shape index: {}]   ;;  %s201_s1 = inlined_call_operand.hbm [shape: f32[17,128], index: 1, kind: input, shape index: {}]   ;;  %s202_s2 = inlined_call_operand.hbm [shape: f32[8,128], index: 2, kind: output, shape index: {}]  }
   0x1   :  { %s76_s11 = scalar_lea.hbm %s200_s0, 16 }
   0x2   :  { %p77_p0 = scmp.ne.s32.totalorder %s200_s0, %s76_s11  ;;  %p80_p1 = scmp.lt.u32.totalorder %s76_s11, %s200_s0 }
   0x4   :  { %p82_p2 = pnand %p80_p1, %p77_p0 }
   0x6   :  { %85 = shalt.err (!%p82_p2)  }
   0x7   :  { %s144_s16 = smov [#allocation3]  }
   0x8   :  { %8 = dma.hbm_to_smem %s200_s0, 16, %s144_s16, [#allocation2] }
   0x9   :  { %134 = dma.done.wait [#allocation2], 16 }
   0xa   :  { %135 = vsyncadd [#allocation2], 4294967280 }
   0xb   :  { %10 = sfence }
   0xc   :  { %11 = vsyncpa [#allocation5], 0 }
   0xd   :  { %12 = vsyncpa [#allocation6], 0  ;;  %s145_s19 = smov [#allocation4]   ;;  %s86_s23 = scalar_lea.hbm %s201_s1, 384 }
   0xe   :  { %s18_s20 = sshll.u32 %s145_s19, 4  ;;  %p87_p3 = scmp.ne.s32.totalorder %s201_s1, %s86_s23  ;;  %s19_s20 = int_to_ptr.vmem [resolvable:$true] %s18_s20 }
   0xf   :  { %p90_p4 = scmp.lt.u32.totalorder %s86_s23, %s201_s1 }
  0x11   :  { %p92_p5 = pnand %p90_p4, %p87_p3 }
  0x13   :  { %95 = shalt.err (!%p92_p5)
}
  0x14   :  { %s96_s0 = scalar_lea.vmem %s19_s20, 384  ;;  %p101_p7 = scmp.lt.s32.totalorder %s19_s20, %s19_s20 }
  0x15   :  { %p97_p6 = scmp.ne.s32.totalorder %s19_s20, %s96_s0  ;;  %p102_p8 = scmp.lt.s32.totalorder %s96_s0, %s96_s0 }
  0x17   :  { %p103_p9 = por %p102_p8, %p101_p7 }
  0x19   :  { %p104_p10 = pnand %p103_p9, %p97_p6 }
  0x1b   :  { %107 = shalt.err (!%p104_p10)
}
  0x1c   :  { %s146_s28 = smov 128   ;;  %s147_s29 = smov 8  }
  0x1d   :  { %24 = dma.hbm_to_vmem [thread:$0]  %s201_s1, 384, %s19_s20, [#allocation5], %s146_s28, %s146_s28, %s147_s29  }
  0x1e   :  { %136 = dma.done.wait [#allocation5], 384  }
  0x1f   :  { %137 = vsyncadd [#allocation5], 4294966912  ;;  %s140_s4 = smov 0  }
  0x20 LB: > { %s36_s5 = sld [smem:[#allocation3 + %s142_s4]]  ;;  %s39_s7 = scalar_lea.vmem [#allocation7], %s142_s4  ;;  %s142_s4 = sphi %s140_s4, %s34_s4  }
  0x21   : > { %s34_s4 = sadd.s32 1, %s142_s4  }
  0x22   : > { %p31_p11 = scmp.ge.s32.totalorder %s34_s4, 8  }
  0x23   :  { %s148_s8 = smov (%p31_p11), [#allocation7]  }
  0x24   :  { %33 = sbr.rel (!%p31_p11) target bundleno = 32 (0x20), region = 37  ;;  %s47_s9 = sshll.u32 (%p31_p11), %s148_s8, 4  ;;  %s48_s9 = int_to_ptr.vmem [resolvable:$true] %s47_s9 }
  0x25   :  { %s108_s10 = scalar_lea.vmem (%p31_p11), %s48_s9, 128  ;;  %p113_p13 = scmp.lt.s32.totalorder (%p31_p11), %s48_s9, %s48_s9 }
  0x26   : > { %s37_s6 = scalar_lea.vmem [#allocation4], %s36_s5  ;;  %p109_p12 = scmp.ne.s32.totalorder (%p31_p11), %s48_s9, %s108_s10 }
  0x27   : > { %v38_v0 = vld [vmem:[%s37_s6] sm:$0x1]  ;;  %p114_p0 = scmp.lt.s32.totalorder (%p31_p11), %s108_s10, %s108_s10 }
  0x28   : > { %40 = vst [vmem:[%s39_s7] sm:$0x1] %v38_v0 }
  0x29   :  { %p115_p1 = por (%p31_p11), %p114_p0, %p113_p13 }
  0x2b   :  { %p116_p2 = pnand %p115_p1, %p109_p12 }
  0x2d   :  { %119 = shalt.err (!%p116_p2)
}
  0x2e   :  { %s120_s12 = scalar_lea.hbm %s202_s2, 128 }
  0x2f   :  { %p121_p3 = scmp.ne.s32.totalorder %s202_s2, %s120_s12  ;;  %p124_p4 = scmp.lt.u32.totalorder %s120_s12, %s202_s2 }
  0x31   :  { %p126_p5 = pnand %p124_p4, %p121_p3 }
  0x33   :  { %129 = shalt.err (!%p126_p5)
}
  0x34   :  { %50 = dma.vmem_to_hbm [thread:$0]  %s48_s9, 128, %s202_s2, [#allocation6]  }
  0x35   :  { %138 = dma.done.wait [#allocation6], 128  }
  0x36   :  { %139 = vsyncadd [#allocation6], 4294967168 }
  0x37   :  { %54 = vsyncpa [#allocation5], 1 }
  0x38   :  { %55 = vsyncpa [#allocation6], 1 }

</bundles_post_ra>
